<compile_context>
chip_gen: v7x
topology: tpu7x:2x2x1
jax: 0.10.0
libtpu: 0.0.40
codegen_flags: <defaults>
</compile_context>

<pallas_src>
import jax
import jax.numpy as jnp
from jax.experimental import pallas as pl
from jax.experimental.pallas import tpu as pltpu

# ---------------------------------------------------------------------------
# scaled-down wav2vec2 config
# ---------------------------------------------------------------------------
CONV_DIM = (32, 32, 32)       # real model: (512,)*7
CONV_KERNEL = (10, 3, 3)      # real model: (10,3,3,3,3,2,2)
CONV_STRIDE = (5, 2, 2)       # real model: (5,2,2,2,2,2,2)
HIDDEN = 32                   # real model: 1024
NUM_LAYERS = 2                # real model: 24
NUM_HEADS = 4                 # real model: 16
HEAD_DIM = HIDDEN // NUM_HEADS
FFN_DIM = 64                  # real model: 4096
POS_CONV_KERNEL = 5           # real model: 128 (odd kernel -> no SamePad trim)
POS_CONV_GROUPS = 4           # real model: 16
LN_EPS = 1e-5

MXU_DTYPE = jnp.bfloat16      # MXU operand dtype (accumulate in f32)


# ---------------------------------------------------------------------------
# in-kernel helpers
# ---------------------------------------------------------------------------
def _gelu(x):
    # exact (erf-based) GELU, matching torch.nn.functional.gelu default
    return 0.5 * x * (1.0 + jax.lax.erf(x * (2.0 ** -0.5)))


def _ln(x, g, b):
    mu = jnp.mean(x, axis=-1, keepdims=True)
    var = jnp.mean(jnp.square(x - mu), axis=-1, keepdims=True)
    return (x - mu) * jax.lax.rsqrt(var + LN_EPS) * g + b


def _dot(a, b):
    # bf16 MXU operands, f32 accumulation; vector math around it stays f32.
    return jnp.dot(a.astype(MXU_DTYPE), b.astype(MXU_DTYPE),
                   preferred_element_type=jnp.float32)


# ---------------------------------------------------------------------------
# pallas_call plumbing: single-step grid, full-array blocks resident in VMEM
# ---------------------------------------------------------------------------
def _full_spec(x):
    shape = tuple(x.shape)
    return pl.BlockSpec(shape, lambda *_, n=len(shape): (0,) * n)


def _fused_call(kernel, out_shape, args, scratch_shapes=()):
    return pl.pallas_call(
        kernel,
        out_shape=out_shape,
        grid=(1,),
        in_specs=[_full_spec(a) for a in args],
        out_specs=_full_spec(out_shape),
        scratch_shapes=list(scratch_shapes),
    )(*args)


# ---------------------------------------------------------------------------
# Pallas kernels
# ---------------------------------------------------------------------------
def _conv_ln_gelu_kernel(p_ref, w_ref, b_ref, g_ref, beta_ref, o_ref):
    # fused: im2col-matmul conv -> LayerNorm(channels) -> GELU
    y = _dot(p_ref[...], w_ref[...]) + b_ref[...]
    y = _ln(y, g_ref[...], beta_ref[...])
    o_ref[...] = _gelu(y).astype(o_ref.dtype)


def _ln_linear_kernel(x_ref, g_ref, beta_ref, w_ref, b_ref, o_ref):
    # fused: LayerNorm -> Linear  (feature projection; dropout = identity)
    hn = _ln(x_ref[...].astype(jnp.float32), g_ref[...], beta_ref[...])
    o_ref[...] = (_dot(hn, w_ref[...]) + b_ref[...]).astype(o_ref.dtype)


def _ln_kernel(x_ref, g_ref, b_ref, o_ref):
    o_ref[...] = _ln(x_ref[...].astype(jnp.float32),
                     g_ref[...], b_ref[...]).astype(o_ref.dtype)


def _pos_conv_kernel(p_ref, w_ref, b_ref, h_ref, o_ref, conv_scr):
    # fused: grouped positional conv (all groups) -> GELU -> residual add
    cg = HIDDEN // POS_CONV_GROUPS
    for g in range(POS_CONV_GROUPS):
        yg = _dot(p_ref[g], w_ref[g])                       # (B*T, cg)
        conv_scr[:, g * cg:(g + 1) * cg] = yg
    y = conv_scr[...] + b_ref[...]
    o_ref[...] = (h_ref[...] + _gelu(y)).astype(o_ref.dtype)


def _make_encoder_layer_kernel(B, T):
    """Whole transformer encoder layer (stable-LN variant) in one kernel."""
    D, H, Dh = HIDDEN, NUM_HEADS, HEAD_DIM
    scale = Dh ** -0.5

    def kernel(h_ref, ln1g, ln1b, wqkv, bqkv, wo, bo,
               ln2g, ln2b, w1, b1, w2, b2, o_ref, ctx_scr):
        x = h_ref[...].astype(jnp.float32)                  # (B*T, D)

        # ---- self-attention block (pre-LN) ----
        hn = _ln(x, ln1g[...], ln1b[...])
        qkv = _dot(hn, wqkv[...]) + bqkv[...]               # (B*T, 3D) fused QKV
        q = qkv[:, 0:D] * scale
        k = qkv[:, D:2 * D]
        v = qkv[:, 2 * D:3 * D]

        # all (batch, head) pairs resident; static unrolled loop, one launch
        for b in range(B):
            rs, re = b * T, (b + 1) * T
            for hd in range(H):
                cs, ce = hd * Dh, (hd + 1) * Dh
                qh = q[rs:re, cs:ce]                        # (T, Dh)
                kh = k[rs:re, cs:ce]
                vh = v[rs:re, cs:ce]
                s = jnp.dot(qh, kh.T, preferred_element_type=jnp.float32)
                s = s - jnp.max(s, axis=-1, keepdims=True)
                p = jnp.exp(s)
                p = p * pl.reciprocal(jnp.sum(p, axis=-1, keepdims=True),
                                      approx=True)
                ctx_scr[rs:re, cs:ce] = jnp.dot(
                    p, vh, preferred_element_type=jnp.float32)

        attn = _dot(ctx_scr[...], wo[...]) + bo[...]
        x = x + attn                                        # residual (fused)

        # ---- feed-forward block (pre-LN) ----
        hn2 = _ln(x, ln2g[...], ln2b[...])
        ff = _gelu(_dot(hn2, w1[...]) + b1[...])
        ff = _dot(ff, w2[...]) + b2[...]
        o_ref[...] = (x + ff).astype(o_ref.dtype)           # residual (fused)

    return kernel


# ---------------------------------------------------------------------------
# wrappers (plain-JAX glue: im2col patch extraction, weight packing, reshapes)
# ---------------------------------------------------------------------------
def conv_feature_layer(x, w, b, ln_g, ln_b, stride):
    """x:(B,T,Cin) channels-last, w:(Cout,Cin,K) torch layout -> (B,T_out,Cout)."""
    B, T, Cin = x.shape
    Cout, _, K = w.shape
    T_out = (T - K) // stride + 1
    idx = jnp.arange(T_out)[:, None] * stride + jnp.arange(K)[None, :]
    patches = x[:, idx, :].reshape(B * T_out, K * Cin)      # (B*T_out, K*Cin)
    w_r = jnp.transpose(w, (2, 1, 0)).reshape(K * Cin, Cout)
    out = _fused_call(
        _conv_ln_gelu_kernel,
        jax.ShapeDtypeStruct((B * T_out, Cout), jnp.float32),
        (patches.astype(jnp.float32), w_r.astype(jnp.float32),
         b.reshape(1, Cout).astype(jnp.float32),
         ln_g.reshape(1, Cout).astype(jnp.float32),
         ln_b.reshape(1, Cout).astype(jnp.float32)),
    )
    return out.reshape(B, T_out, Cout)


def pos_conv_residual(hidden, pos_w, pos_b):
    """hidden:(B,T,D); grouped conv (pad=K//2) + GELU + residual, one call."""
    B, T, D = hidden.shape
    G = POS_CONV_GROUPS
    cin_g = D // G
    cg = D // G
    K = POS_CONV_KERNEL
    pad = K // 2
    xp = jnp.pad(hidden, ((0, 0), (pad, pad), (0, 0)))
    idx = jnp.arange(T)[:, None] + jnp.arange(K)[None, :]
    patches = xp[:, idx, :]                                 # (B, T, K, D)
    patches = patches.reshape(B, T, K, G, cin_g)
    patches = patches.transpose(3, 0, 1, 2, 4).reshape(G, B * T, K * cin_g)
    # pos_w: (D, cin_g, K) -> per group (K*cin_g, cg)
    w_g = (pos_w.reshape(G, cg, cin_g, K)
                 .transpose(0, 3, 2, 1)
                 .reshape(G, K * cin_g, cg))
    out = _fused_call(
        _pos_conv_kernel,
        jax.ShapeDtypeStruct((B * T, D), jnp.float32),
        (patches.astype(jnp.float32), w_g.astype(jnp.float32),
         pos_b.reshape(1, D).astype(jnp.float32),
         hidden.reshape(B * T, D).astype(jnp.float32)),
        scratch_shapes=[pltpu.VMEM((B * T, D), jnp.float32)],
    )
    return out


def encoder_layer(hidden_flat, lyr, B, T):
    D = HIDDEN
    wqkv = jnp.concatenate([lyr["q_w"], lyr["k_w"], lyr["v_w"]], axis=1)  # (D,3D)
    bqkv = jnp.concatenate([lyr["q_b"], lyr["k_b"], lyr["v_b"]]).reshape(1, 3 * D)
    args = (hidden_flat,
            lyr["ln1_g"].reshape(1, D), lyr["ln1_b"].reshape(1, D),
            wqkv, bqkv,
            lyr["o_w"], lyr["o_b"].reshape(1, D),
            lyr["ln2_g"].reshape(1, D), lyr["ln2_b"].reshape(1, D),
            lyr["ff1_w"], lyr["ff1_b"].reshape(1, FFN_DIM),
            lyr["ff2_w"], lyr["ff2_b"].reshape(1, D))
    return _fused_call(
        _make_encoder_layer_kernel(B, T),
        jax.ShapeDtypeStruct((B * T, D), jnp.float32),
        args,
        scratch_shapes=[pltpu.VMEM((B * T, D), jnp.float32)],
    )


# ---------------------------------------------------------------------------
# forward pass (mirrors HF Wav2Vec2Model, stable-layer-norm variant, eval mode)
# ---------------------------------------------------------------------------
def wav2vec2_forward(params, x):
    B = x.shape[0]
    h = x[:, :, None].astype(jnp.float32)                   # (B, T, 1) channels-last

    # ---- feature extractor: per layer fused conv -> LN(channels) -> GELU ----
    for layer, stride in zip(params["feat_extract"], CONV_STRIDE):
        h = conv_feature_layer(h, layer["w"], layer["b"],
                               layer["ln_g"], layer["ln_b"], stride)

    B, T, C = h.shape                                       # extract_features (B,T,C)

    # ---- feature projection: fused LayerNorm -> Linear (dropout = identity) ----
    fp = params["feat_proj"]
    hidden = _fused_call(
        _ln_linear_kernel,
        jax.ShapeDtypeStruct((B * T, HIDDEN), jnp.float32),
        (h.reshape(B * T, C),
         fp["ln_g"].reshape(1, C), fp["ln_b"].reshape(1, C),
         fp["w"], fp["b"].reshape(1, HIDDEN)),
    )

    # ---- encoder (stable layer norm) ----
    enc = params["encoder"]
    # positional conv embedding: grouped conv + GELU + residual, one call
    hidden = pos_conv_residual(hidden.reshape(B, T, HIDDEN),
                               enc["pos_w"], enc["pos_b"])  # (B*T, D)

    for lyr in enc["layers"]:
        hidden = encoder_layer(hidden, lyr, B, T)

    # final encoder LayerNorm
    hidden = _fused_call(
        _ln_kernel,
        jax.ShapeDtypeStruct((B * T, HIDDEN), jnp.float32),
        (hidden, enc["ln_g"].reshape(1, HIDDEN), enc["ln_b"].reshape(1, HIDDEN)),
    )
    return hidden.reshape(B, T, HIDDEN)                     # last_hidden_state


# ---------------------------------------------------------------------------
# deterministic parameter init
# ---------------------------------------------------------------------------
def init_params(key):
    keys = iter(jax.random.split(key, 128))

    def norm(shape, scale=0.05):
        return scale * jax.random.normal(next(keys), shape, jnp.float32)

    params = {}
    feat = []
    in_c = 1
    for c, k in zip(CONV_DIM, CONV_KERNEL):
        feat.append(dict(
            w=norm((c, in_c, k), 0.2),
            b=norm((c,), 0.02),
            ln_g=jnp.ones((c,), jnp.float32),
            ln_b=jnp.zeros((c,), jnp.float32),
        ))
        in_c = c
    params["feat_extract"] = feat

    params["feat_proj"] = dict(
        ln_g=jnp.ones((in_c,), jnp.float32),
        ln_b=jnp.zeros((in_c,), jnp.float32),
        w=norm((in_c, HIDDEN)),
        b=jnp.zeros((HIDDEN,), jnp.float32),
    )

    layers = []
    for _ in range(NUM_LAYERS):
        layers.append(dict(
            ln1_g=jnp.ones((HIDDEN,), jnp.float32), ln1_b=jnp.zeros((HIDDEN,), jnp.float32),
            q_w=norm((HIDDEN, HIDDEN)), q_b=jnp.zeros((HIDDEN,), jnp.float32),
            k_w=norm((HIDDEN, HIDDEN)), k_b=jnp.zeros((HIDDEN,), jnp.float32),
            v_w=norm((HIDDEN, HIDDEN)), v_b=jnp.zeros((HIDDEN,), jnp.float32),
            o_w=norm((HIDDEN, HIDDEN)), o_b=jnp.zeros((HIDDEN,), jnp.float32),
            ln2_g=jnp.ones((HIDDEN,), jnp.float32), ln2_b=jnp.zeros((HIDDEN,), jnp.float32),
            ff1_w=norm((HIDDEN, FFN_DIM)), ff1_b=jnp.zeros((FFN_DIM,), jnp.float32),
            ff2_w=norm((FFN_DIM, HIDDEN)), ff2_b=jnp.zeros((HIDDEN,), jnp.float32),
        ))

    params["encoder"] = dict(
        pos_w=norm((HIDDEN, HIDDEN // POS_CONV_GROUPS, POS_CONV_KERNEL)),
        pos_b=jnp.zeros((HIDDEN,), jnp.float32),
        layers=layers,
        ln_g=jnp.ones((HIDDEN,), jnp.float32),
        ln_b=jnp.zeros((HIDDEN,), jnp.float32),
    )
    return params


# ---------------------------------------------------------------------------
# main
# ---------------------------------------------------------------------------
if __name__ == "__main__":
    key = jax.random.PRNGKey(0)
    pkey, xkey = jax.random.split(key)
    params = init_params(pkey)

    B, T_SAMPLES = 2, 400          # (B, T_samples) raw waveform input
    x = jax.random.normal(xkey, (B, T_SAMPLES), jnp.float32)

    last_hidden_state = wav2vec2_forward(params, x)
    last_hidden_state = jax.block_until_ready(last_hidden_state)

    # expected sequence length after the conv feature extractor: 400 -> 79 -> 39 -> 19
    assert last_hidden_state.shape == (B, 19, HIDDEN)
    assert jnp.all(jnp.isfinite(last_hidden_state))
    print("KERNEL_OK")
</pallas_src>

<mosaic_0001>
module attributes {stable_mosaic.version = 11 : i64} {
  func.func @_conv_ln_gelu_kernel(%arg0: i32, %arg1: memref<158x10xf32, #tpu.memory_space<vmem>>, %arg2: memref<10x32xf32, #tpu.memory_space<vmem>>, %arg3: memref<1x32xf32, #tpu.memory_space<vmem>>, %arg4: memref<1x32xf32, #tpu.memory_space<vmem>>, %arg5: memref<1x32xf32, #tpu.memory_space<vmem>>, %arg6: memref<158x32xf32, #tpu.memory_space<vmem>>) attributes {dimension_semantics = [#tpu.dimension_semantics<arbitrary>], iteration_bounds = array<i64: 1>, scalar_prefetch = 0 : i64, scratch_operands = 0 : i64, tpu.core_type = #tpu.core_type<tc>, window_params = [{pipeline_mode = #tpu.pipeline_mode<synchronous>, transform_indices = @transform_0, window_bounds = array<i64: 158, 10>}, {pipeline_mode = #tpu.pipeline_mode<synchronous>, transform_indices = @transform_1, window_bounds = array<i64: 10, 32>}, {pipeline_mode = #tpu.pipeline_mode<synchronous>, transform_indices = @transform_2, window_bounds = array<i64: 1, 32>}, {pipeline_mode = #tpu.pipeline_mode<synchronous>, transform_indices = @transform_3, window_bounds = array<i64: 1, 32>}, {pipeline_mode = #tpu.pipeline_mode<synchronous>, transform_indices = @transform_4, window_bounds = array<i64: 1, 32>}, {pipeline_mode = #tpu.pipeline_mode<synchronous>, transform_indices = @transform_5, window_bounds = array<i64: 158, 32>}]} {
    %c0 = arith.constant 0 : index
    %c0_0 = arith.constant 0 : index
    %0 = vector.load %arg1[%c0, %c0_0] : memref<158x10xf32, #tpu.memory_space<vmem>>, vector<158x10xf32>
    %c0_1 = arith.constant 0 : index
    %c0_2 = arith.constant 0 : index
    %1 = vector.load %arg2[%c0_1, %c0_2] : memref<10x32xf32, #tpu.memory_space<vmem>>, vector<10x32xf32>
    %2 = arith.truncf %0 : vector<158x10xf32> to vector<158x10xbf16>
    %3 = arith.truncf %1 : vector<10x32xf32> to vector<10x32xbf16>
    %cst = arith.constant dense<0.000000e+00> : vector<158x32xf32>
    %4 = tpu.matmul %2, %3, %cst {dimension_numbers = #tpu.dot_dimension_numbers<[1], [0], [0], [1], [0, 0, 1, 1], [], []>} : vector<158x10xbf16>, vector<10x32xbf16>, vector<158x32xf32> -> vector<158x32xf32>
    %c0_3 = arith.constant 0 : index
    %c0_4 = arith.constant 0 : index
    %5 = vector.load %arg3[%c0_3, %c0_4] : memref<1x32xf32, #tpu.memory_space<vmem>>, vector<1x32xf32>
    %6 = vector.broadcast %5 : vector<1x32xf32> to vector<158x32xf32>
    %7 = arith.addf %4, %6 : vector<158x32xf32>
    %c0_5 = arith.constant 0 : index
    %c0_6 = arith.constant 0 : index
    %8 = vector.load %arg4[%c0_5, %c0_6] : memref<1x32xf32, #tpu.memory_space<vmem>>, vector<1x32xf32>
    %c0_7 = arith.constant 0 : index
    %c0_8 = arith.constant 0 : index
    %9 = vector.load %arg5[%c0_7, %c0_8] : memref<1x32xf32, #tpu.memory_space<vmem>>, vector<1x32xf32>
    %cst_9 = arith.constant dense<0.000000e+00> : vector<158xf32>
    %10 = vector.multi_reduction <add>, %7, %cst_9 [1] : vector<158x32xf32> to vector<158xf32>
    %11 = vector.shape_cast %10 : vector<158xf32> to vector<158x1xf32>
    %cst_10 = arith.constant 3.200000e+01 : f32
    %12 = vector.broadcast %cst_10 : f32 to vector<158x1xf32>
    %13 = arith.divf %11, %12 : vector<158x1xf32>
    %14 = vector.broadcast %13 : vector<158x1xf32> to vector<158x32xf32>
    %15 = arith.subf %7, %14 : vector<158x32xf32>
    %16 = arith.mulf %15, %15 : vector<158x32xf32>
    %cst_11 = arith.constant dense<0.000000e+00> : vector<158xf32>
    %17 = vector.multi_reduction <add>, %16, %cst_11 [1] : vector<158x32xf32> to vector<158xf32>
    %18 = vector.shape_cast %17 : vector<158xf32> to vector<158x1xf32>
    %cst_12 = arith.constant 3.200000e+01 : f32
    %19 = vector.broadcast %cst_12 : f32 to vector<158x1xf32>
    %20 = arith.divf %18, %19 : vector<158x1xf32>
    %21 = vector.broadcast %13 : vector<158x1xf32> to vector<158x32xf32>
    %22 = arith.subf %7, %21 : vector<158x32xf32>
    %cst_13 = arith.constant 9.99999974E-6 : f32
    %23 = vector.broadcast %cst_13 : f32 to vector<158x1xf32>
    %24 = arith.addf %20, %23 : vector<158x1xf32>
    %25 = math.rsqrt %24 : vector<158x1xf32>
    %26 = vector.broadcast %25 : vector<158x1xf32> to vector<158x32xf32>
    %27 = arith.mulf %22, %26 : vector<158x32xf32>
    %28 = vector.broadcast %8 : vector<1x32xf32> to vector<158x32xf32>
    %29 = arith.mulf %27, %28 : vector<158x32xf32>
    %30 = vector.broadcast %9 : vector<1x32xf32> to vector<158x32xf32>
    %31 = arith.addf %29, %30 : vector<158x32xf32>
    %cst_14 = arith.constant 5.000000e-01 : f32
    %32 = vector.broadcast %cst_14 : f32 to vector<158x32xf32>
    %33 = arith.mulf %32, %31 : vector<158x32xf32>
    %cst_15 = arith.constant 0.707106769 : f32
    %34 = vector.broadcast %cst_15 : f32 to vector<158x32xf32>
    %35 = arith.mulf %31, %34 : vector<158x32xf32>
    %36 = math.erf %35 : vector<158x32xf32>
    %cst_16 = arith.constant 1.000000e+00 : f32
    %37 = vector.broadcast %cst_16 : f32 to vector<158x32xf32>
    %38 = arith.addf %37, %36 : vector<158x32xf32>
    %39 = arith.mulf %33, %38 : vector<158x32xf32>
    %c0_17 = arith.constant 0 : index
    %c0_18 = arith.constant 0 : index
    %40 = vector.load %arg6[%c0_17, %c0_18] : memref<158x32xf32, #tpu.memory_space<vmem>>, vector<158x32xf32>
    tpu.vector_store %arg6[%c0_17, %c0_18], %39 {strides = array<i32>} : memref<158x32xf32, #tpu.memory_space<vmem>>, vector<158x32xf32>,
    return
  }
  func.func @transform_0(%arg0: i32) -> (i32, i32) {
    %c0_i32 = arith.constant 0 : i32
    %c0_i32_0 = arith.constant 0 : i32
    %c0_i32_1 = arith.constant 0 : i32
    return %c0_i32, %c0_i32_0 : i32, i32
  }
  func.func @transform_1(%arg0: i32) -> (i32, i32) {
    %c0_i32 = arith.constant 0 : i32
    %c0_i32_0 = arith.constant 0 : i32
    %c0_i32_1 = arith.constant 0 : i32
    return %c0_i32, %c0_i32_0 : i32, i32
  }
  func.func @transform_2(%arg0: i32) -> (i32, i32) {
    %c0_i32 = arith.constant 0 : i32
    %c0_i32_0 = arith.constant 0 : i32
    %c0_i32_1 = arith.constant 0 : i32
    return %c0_i32, %c0_i32_0 : i32, i32
  }
  func.func @transform_3(%arg0: i32) -> (i32, i32) {
    %c0_i32 = arith.constant 0 : i32
    %c0_i32_0 = arith.constant 0 : i32
    %c0_i32_1 = arith.constant 0 : i32
    return %c0_i32, %c0_i32_0 : i32, i32
  }
  func.func @transform_4(%arg0: i32) -> (i32, i32) {
    %c0_i32 = arith.constant 0 : i32
    %c0_i32_0 = arith.constant 0 : i32
    %c0_i32_1 = arith.constant 0 : i32
    return %c0_i32, %c0_i32_0 : i32, i32
  }
  func.func @transform_5(%arg0: i32) -> (i32, i32) {
    %c0_i32 = arith.constant 0 : i32
    %c0_i32_0 = arith.constant 0 : i32
    %c0_i32_1 = arith.constant 0 : i32
    return %c0_i32, %c0_i32_0 : i32, i32
  }
}

</mosaic_0001>

<bundles_post_ra>
// kernel: tpu_custom_call.1
= control target key start
LH: loop header
LB: loop body
LE: loop exit
PB: predicated region body
PF: predicated region fallthrough
CT: control target
= control target key end

     0   :  { %vm92_vm0 = vcmask 1044480   ;;  %vm61_vm1 = vcmask 80896   ;;  %vm211_vm2 = vcmask 261120   ;;  %vm269_vm3 = vcmask 259072   ;;  %s1293_s1 = inlined_call_operand.vmem [shape: f32[10,32], index: 1, kind: input, shape index: {}]   ;;  %s1294_s0 = inlined_call_operand.vmem [shape: f32[158,10], index: 0, kind: input, shape index: {}]   ;;  %s1295_s2 = inlined_call_operand.vmem [shape: f32[1,32], index: 2, kind: input, shape index: {}]   ;;  %s1296_s3 = inlined_call_operand.vmem [shape: f32[1,32], index: 3, kind: input, shape index: {}]   ;;  %s1297_s4 = inlined_call_operand.vmem [shape: f32[1,32], index: 4, kind: input, shape index: {}]   ;;  %s1298_s5 = inlined_call_operand.vmem [shape: f32[158,32], index: 5, kind: output, shape index: {}]  }
   0x1   :  { %v41_v0 = vld [vmem:[%s1293_s1] sm:$0xff]  ;;  %v42_v1 = vld [vmem:[%s1293_s1 + $0x8] sm:$0x3]  ;;  %v23_v9 = vld [vmem:[%s1294_s0 + $0x10] sm:$0xff] }
   0x2   :  { %v21_v2 = vld [vmem:[%s1294_s0] sm:$0xff]  ;;  %v53_v3 = vpack.c.bf16 %v42_v1, %v41_v0  ;;  %v22_v4 = vld [vmem:[%s1294_s0 + $0x8] sm:$0xff]  ;;  %v24_v10 = vld [vmem:[%s1294_s0 + $0x18] sm:$0xff] }
   0x3   :  { %v33_v5 = vld [vmem:[%s1294_s0 + $0x60] sm:$0xff]  ;;  %v34_v6 = vld [vmem:[%s1294_s0 + $0x68] sm:$0xff]  ;;  %v43_v7 = vpack.c.bf16 %v22_v4, %v21_v2  ;;  %v35_v11 = vld [vmem:[%s1294_s0 + $0x70] sm:$0xff]  ;;  %v44_v13 = vpack.c.bf16 %v24_v10, %v23_v9 }
   0x4   :  { %v49_v8 = vpack.c.bf16 %v34_v6, %v33_v5  ;;  %698 = vmatprep.subr.msk.bf16.mxu0 %vm92_vm0, %v53_v3  ;;  %699 = vmatprep.subr.msk.bf16.mxu1 %vm92_vm0, %v53_v3  ;;  %v94_v12 = vsel %vm92_vm0, %v53_v3, 0  ;;  %v36_v14 = vld [vmem:[%s1294_s0 + $0x78] sm:$0xff]  ;;  %v25_v15 = vld [vmem:[%s1294_s0 + $0x20] sm:$0xff]  ;;  %v26_v16 = vld [vmem:[%s1294_s0 + $0x28] sm:$0xff] }
   0x5   :  { %675 = vmatpush3.bf16.msra.mxu0 %v94_v12  ;;  %697 = vmatpush3.bf16.msra.mxu1 %v94_v12  ;;  %v50_v17 = vpack.c.bf16 %v36_v14, %v35_v11  ;;  %v45_v18 = vpack.c.bf16 %v26_v16, %v25_v15  ;;  %v37_v19 = vld [vmem:[%s1294_s0 + $0x80] sm:$0xff]  ;;  %v38_v20 = vld [vmem:[%s1294_s0 + $0x88] sm:$0xff]  ;;  %v27_v22 = vld [vmem:[%s1294_s0 + $0x30] sm:$0xff] }
   0x6   :  { %676 = vmatprep.mubr.msk.bf16.mxu0 %vm61_vm1, %v43_v7  ;;  %688 = vmatprep.mubr.msk.bf16.mxu1 %vm61_vm1, %v49_v8  ;;  %v51_v21 = vpack.c.bf16 %v38_v20, %v37_v19  ;;  %v28_v23 = vld [vmem:[%s1294_s0 + $0x38] sm:$0xff]  ;;  %v39_v24 = vld [vmem:[%s1294_s0 + $0x90] sm:$0xff]  ;;  %v29_v26 = vld [vmem:[%s1294_s0 + $0x40] sm:$0xff] }
   0x7   :  { %v40_v25 = vld [vmem:[%s1294_s0 + $0x98] sm:$0x3f]  ;;  %v30_v27 = vld [vmem:[%s1294_s0 + $0x48] sm:$0xff]  ;;  %v46_v28 = vpack.c.bf16 %v28_v23, %v27_v22  ;;  %v31_v31 = vld [vmem:[%s1294_s0 + $0x50] sm:$0xff] }
   0x8   :  { %677 = vmatmul.mubr.msk.bf16.vlgmr.msra.gmra.mrb[0].mxu0 %vm61_vm1, %v44_v13  ;;  %689 = vmatmul.mubr.msk.bf16.vlgmr.msra.gmra.mrb[0].mxu1 %vm61_vm1, %v50_v17  ;;  %v52_v29 = vpack.c.bf16 %v40_v25, %v39_v24  ;;  %v47_v30 = vpack.c.bf16 %v30_v27, %v29_v26  ;;  %v32_v32 = vld [vmem:[%s1294_s0 + $0x58] sm:$0xff]  ;;  %v889_v34 = vld [vmem:[%s1295_s2] ss:$0 sm:$0xff] }
   0x9   :  { %680 = vmatprep.mubr.msk.bf16.mxu0 %vm61_vm1, %v45_v18  ;;  %692 = vmatprep.mubr.msk.bf16.mxu1 %vm61_vm1, %v51_v21  ;;  %v48_v33 = vpack.c.bf16 %v32_v32, %v31_v31 }
  0x10   :  { %681 = vmatmul.mubr.msk.bf16.gmra.mrb[4].mxu0 %vm61_vm1, %v46_v28  ;;  %693 = vmatmul.mubr.msk.bf16.gmra.mrb[4].mxu1 %vm61_vm1, %v52_v29 }
  0x11   :  { %684 = vmatprep.mubr.msk.bf16.mxu0 %vm61_vm1, %v47_v30 }
  0x18   :  { %685 = vmatmul.mubr.msk.bf16.gmra.mrb[8].mxu0 %vm61_vm1, %v48_v33 }
  0xdb   :  { %v678_v35 = vpop.f32.mrb[0].mxu0  ;;  %v690_v36 = vpop.f32.mrb[0].mxu1 }
  0xdc   :  { %v892_v37 = vadd.f32 %v678_v35, %v889_v34  ;;  %v895_v38 = vadd.f32 %v690_v36, %v889_v34  ;;  %v130_v39 = vpop.f32.mrb[1].mxu0  ;;  %v178_v40 = vpop.f32.mrb[1].mxu1 }
  0xdd   :  { %v679_v41 = vpop.f32.mrb[2].mxu0  ;;  %v691_v42 = vpop.f32.mrb[2].mxu1  ;;  %v898_v43 = vadd.f32 %v889_v34, %v130_v39  ;;  %v908_v49 = vadd.f32 %v889_v34, %v178_v40 }
  0xde   :  { %v901_v44 = vadd.f32 %v679_v41, %v889_v34  ;;  %v133_v45 = vpop.f32.mrb[3].mxu0  ;;  %v181_v46 = vpop.f32.mrb[3].mxu1  ;;  %v254_v47 = vsel %vm211_vm2, %v895_v38, 0.0  ;;  %v218_v48 = vsel %vm211_vm2, %v892_v37, 0.0  ;;  %v911_v50 = vadd.f32 %v691_v42, %v889_v34 }
  0xdf   :  { %255 = vadd.xlane.f32.xlu0 %v254_v47  ;;  %219 = vadd.xlane.f32.xlu1 %v218_v48  ;;  %v212_v52 = vsel %vm211_vm2, %v898_v43, 0.0  ;;  %v918_v59 = vadd.f32 %v889_v34, %v133_v45  ;;  %v921_v60 = vadd.f32 %v889_v34, %v181_v46  ;;  %v248_v62 = vsel %vm211_vm2, %v908_v49, 0.0 }
  0xe0   :  { %v221_v51 = vsel %vm211_vm2, %v901_v44, 0.0  ;;  %v257_v61 = vsel %vm211_vm2, %v911_v50, 0.0 }
  0xe1   :  { %v251_v3 = vsel %vm211_vm2, %v921_v60, 0.0  ;;  %v215_v4 = vsel %vm211_vm2, %v918_v59, 0.0 }
  0xe3   :  { %222 = vadd.xlane.f32.xlu1 %v221_v51  ;;  %213 = vadd.xlane.f32.xlu0 %v212_v52  ;;  %v682_v53 = vpop.f32.mrb[4].mxu0  ;;  %v694_v54 = vpop.f32.mrb[4].mxu1 }
  0xe4   :  { %v146_v55 = vpop.f32.mrb[5].mxu0  ;;  %v194_v56 = vpop.f32.mrb[5].mxu1  ;;  %v928_v1 = vadd.f32 %v682_v53, %v889_v34  ;;  %v978_v25 = vadd.f32 %v694_v54, %v889_v34 }
  0xe5   :  { %v683_v57 = vpop.f32.mrb[6].mxu0  ;;  %v695_v58 = vpop.f32.mrb[6].mxu1  ;;  %v942_v10 = vadd.f32 %v889_v34, %v146_v55  ;;  %v948_v13 = vadd.f32 %v889_v34, %v194_v56 }
  0xe6   :  { %v149_v63 = vpop.f32.mrb[7].mxu0  ;;  %v197_v0 = vpop.f32.mrb[7].mxu1  ;;  %v931_v2 = vadd.f32 %v683_v57, %v889_v34  ;;  %v230_v7 = vsel %vm211_vm2, %v928_v1, 0.0  ;;  %v981_v26 = vadd.f32 %v695_v58, %v889_v34  ;;  %v266_v30 = vsel %vm211_vm2, %v978_v25, 0.0 }
  0xe7   :  { %258 = vadd.xlane.f32.xlu1 %v257_v61  ;;  %249 = vadd.xlane.f32.xlu0 %v248_v62  ;;  %v945_v11 = vadd.f32 %v889_v34, %v149_v63  ;;  %v951_v14 = vadd.f32 %v889_v34, %v197_v0  ;;  %v224_v16 = vsel %vm211_vm2, %v942_v10, 0.0  ;;  %v260_v20 = vsel %vm211_vm2, %v948_v13, 0.0 }
  0xe8   :  { %v233_v6 = vsel %vm211_vm2, %v931_v2, 0.0  ;;  %v270_v29 = vsel %vm269_vm3, %v981_v26, 0.0 }
  0xe9   :  { %v227_v15 = vsel %vm211_vm2, %v945_v11, 0.0  ;;  %v263_v19 = vsel %vm211_vm2, %v951_v14, 0.0 }
  0xeb   :  { %252 = vadd.xlane.f32.xlu1 %v251_v3  ;;  %216 = vadd.xlane.f32.xlu0 %v215_v4  ;;  %v686_v5 = vpop.f32.mrb[8].mxu0 }
  0xec   :  { %v162_v8 = vpop.f32.mrb[9].mxu0  ;;  %v958_v17 = vadd.f32 %v686_v5, %v889_v34 }
  0xed   :  { %v687_v9 = vpop.f32.mrb[10].mxu0  ;;  %v972_v23 = vadd.f32 %v889_v34, %v162_v8 }
  0xee   :  { %v165_v12 = vpop.f32.mrb[11].mxu0  ;;  %v961_v18 = vadd.f32 %v687_v9, %v889_v34  ;;  %v242_v22 = vsel %vm211_vm2, %v958_v17, 0.0 }
  0xef   :  { %234 = vadd.xlane.f32.xlu1 %v233_v6  ;;  %231 = vadd.xlane.f32.xlu0 %v230_v7  ;;  %v975_v24 = vadd.f32 %v889_v34, %v165_v12  ;;  %v236_v28 = vsel %vm211_vm2, %v972_v23, 0.0 }
  0xf0   :  { %v245_v21 = vsel %vm211_vm2, %v961_v18, 0.0 }
  0xf1   :  { %v239_v27 = vsel %vm211_vm2, %v975_v24, 0.0 }
  0xf3   :  { %228 = vadd.xlane.f32.xlu1 %v227_v15  ;;  %225 = vadd.xlane.f32.xlu0 %v224_v16 }
  0xf7   :  { %264 = vadd.xlane.f32.xlu1 %v263_v19  ;;  %261 = vadd.xlane.f32.xlu0 %v260_v20 }
  0xfb   :  { %246 = vadd.xlane.f32.xlu1 %v245_v21  ;;  %243 = vadd.xlane.f32.xlu0 %v242_v22 }
  0xff   :  { %240 = vadd.xlane.f32.xlu1 %v239_v27  ;;  %237 = vadd.xlane.f32.xlu0 %v236_v28 }
 0x103   :  { %271 = vadd.xlane.f32.xlu1 %v270_v29  ;;  %267 = vadd.xlane.f32.xlu0 %v266_v30 }
 0x16c   :  { %v256_v31 = vpop.xlane.xlu0 %255  ;;  %v220_v32 = vpop.xlane.xlu1 %219 }
 0x16d   :  { %v288_v33 = vmul.f32 0.03125, %v256_v31  ;;  %v276_v34 = vmul.f32 0.03125, %v220_v32 }
 0x16f   :  { %v992_v35 = vsub.f32 %v895_v38, %v288_v33  ;;  %v995_v36 = vsub.f32 %v892_v37, %v276_v34 }
 0x170   :  { %v223_v39 = vpop.xlane.xlu1 %222  ;;  %v214_v40 = vpop.xlane.xlu0 %213 }
 0x171   :  { %v277_v41 = vmul.f32 0.03125, %v223_v39  ;;  %v274_v42 = vmul.f32 0.03125, %v214_v40  ;;  %v316_v45 = vmul.f32 %v995_v36, %v995_v36  ;;  %v328_v38 = vmul.f32 %v992_v35, %v992_v35 }
 0x173   :  { %v1000_v46 = vsub.f32 %v901_v44, %v277_v41  ;;  %v1003_v47 = vsub.f32 %v898_v43, %v274_v42  ;;  %v340_v48 = vsel %vm211_vm2, %v316_v45, 0.0  ;;  %v376_v57 = vsel %vm211_vm2, %v328_v38, 0.0 }
 0x174   :  { %v259_v37 = vpop.xlane.xlu1 %258  ;;  %341 = vadd.xlane.f32.xlu0 %v340_v48  ;;  %v250_v51 = vpop.xlane.xlu0 %249 }
 0x175   :  { %v289_v52 = vmul.f32 0.03125, %v259_v37  ;;  %v286_v53 = vmul.f32 0.03125, %v250_v51  ;;  %v317_v54 = vmul.f32 %v1000_v46, %v1000_v46  ;;  %v314_v44 = vmul.f32 %v1003_v47, %v1003_v47 }
 0x177   :  { %v1013_v55 = vsub.f32 %v911_v50, %v289_v52  ;;  %v1016_v43 = vsub.f32 %v908_v49, %v286_v53  ;;  %v343_v56 = vsel %vm211_vm2, %v317_v54, 0.0  ;;  %v334_v3 = vsel %vm211_vm2, %v314_v44, 0.0 }
 0x178   :  { %v253_v58 = vpop.xlane.xlu1 %252  ;;  %344 = vadd.xlane.f32.xlu1 %v343_v56  ;;  %377 = vadd.xlane.f32.xlu0 %v376_v57  ;;  %v217_v61 = vpop.xlane.xlu0 %216 }
 0x179   :  { %v287_v62 = vmul.f32 0.03125, %v253_v58  ;;  %v275_v63 = vmul.f32 0.03125, %v217_v61  ;;  %v329_v0 = vmul.f32 %v1013_v55, %v1013_v55  ;;  %v326_v5 = vmul.f32 %v1016_v43, %v1016_v43 }
 0x17b   :  { %v1024_v50 = vsub.f32 %v921_v60, %v287_v62  ;;  %v1027_v49 = vsub.f32 %v918_v59, %v275_v63  ;;  %v379_v4 = vsel %vm211_vm2, %v329_v0, 0.0  ;;  %v370_v16 = vsel %vm211_vm2, %v326_v5, 0.0 }
 0x17c   :  { %v235_v6 = vpop.xlane.xlu1 %234  ;;  %380 = vadd.xlane.f32.xlu1 %v379_v4  ;;  %335 = vadd.xlane.f32.xlu0 %v334_v3  ;;  %v232_v7 = vpop.xlane.xlu0 %231 }
 0x17d   :  { %v281_v8 = vmul.f32 0.03125, %v235_v6  ;;  %v280_v9 = vmul.f32 0.03125, %v232_v7  ;;  %v315_v12 = vmul.f32 %v1027_v49, %v1027_v49  ;;  %v327_v60 = vmul.f32 %v1024_v50, %v1024_v50 }
 0x17f   :  { %v1037_v59 = vsub.f32 %v931_v2, %v281_v8  ;;  %v1040_v15 = vsub.f32 %v928_v1, %v280_v9  ;;  %v337_v19 = vsel %vm211_vm2, %v315_v12, 0.0  ;;  %v373_v29 = vsel %vm211_vm2, %v327_v60, 0.0 }
 0x180   :  { %v229_v20 = vpop.xlane.xlu1 %228  ;;  %371 = vadd.xlane.f32.xlu0 %v370_v16  ;;  %338 = vadd.xlane.f32.xlu1 %v337_v19  ;;  %v226_v21 = vpop.xlane.xlu0 %225 }
 0x181   :  { %v279_v22 = vmul.f32 0.03125, %v229_v20  ;;  %v278_v27 = vmul.f32 0.03125, %v226_v21  ;;  %v320_v28 = vmul.f32 %v1040_v15, %v1040_v15  ;;  %v321_v31 = vmul.f32 %v1037_v59, %v1037_v59 }
 0x183   :  { %v1048_v2 = vsub.f32 %v945_v11, %v279_v22  ;;  %v1051_v1 = vsub.f32 %v942_v10, %v278_v27  ;;  %v352_v30 = vsel %vm211_vm2, %v320_v28, 0.0  ;;  %v355_v42 = vsel %vm211_vm2, %v321_v31, 0.0 }
 0x184   :  { %v265_v32 = vpop.xlane.xlu1 %264  ;;  %374 = vadd.xlane.f32.xlu1 %v373_v29  ;;  %353 = vadd.xlane.f32.xlu0 %v352_v30  ;;  %v262_v33 = vpop.xlane.xlu0 %261 }
 0x185   :  { %v291_v34 = vmul.f32 0.03125, %v265_v32  ;;  %v290_v39 = vmul.f32 0.03125, %v262_v33  ;;  %v318_v40 = vmul.f32 %v1051_v1, %v1051_v1  ;;  %v319_v11 = vmul.f32 %v1048_v2, %v1048_v2 }
 0x187   :  { %v1061_v10 = vsub.f32 %v951_v14, %v291_v34  ;;  %v1064_v41 = vsub.f32 %v948_v13, %v290_v39  ;;  %v346_v45 = vsel %vm211_vm2, %v318_v40, 0.0  ;;  %v349_v53 = vsel %vm211_vm2, %v319_v11, 0.0 }
 0x188   :  { %v247_v48 = vpop.xlane.xlu1 %246  ;;  %356 = vadd.xlane.f32.xlu1 %v355_v42  ;;  %347 = vadd.xlane.f32.xlu0 %v346_v45  ;;  %v244_v38 = vpop.xlane.xlu0 %243 }
 0x189   :  { %v285_v37 = vmul.f32 0.03125, %v247_v48  ;;  %v284_v51 = vmul.f32 0.03125, %v244_v38  ;;  %v330_v52 = vmul.f32 %v1064_v41, %v1064_v41  ;;  %v331_v44 = vmul.f32 %v1061_v10, %v1061_v10 }
 0x18b   :  { %v1072_v14 = vsub.f32 %v961_v18, %v285_v37  ;;  %v1075_v13 = vsub.f32 %v958_v17, %v284_v51  ;;  %v382_v54 = vsel %vm211_vm2, %v330_v52, 0.0  ;;  %v385_v0 = vsel %vm211_vm2, %v331_v44, 0.0 }
 0x18c   :  { %v241_v56 = vpop.xlane.xlu1 %240  ;;  %350 = vadd.xlane.f32.xlu1 %v349_v53  ;;  %383 = vadd.xlane.f32.xlu0 %v382_v54  ;;  %v238_v57 = vpop.xlane.xlu0 %237  ;;  %v1114_v53 = vld [vmem:[%s1296_s3] ss:$0 sm:$0xff] }
 0x18d   :  { %v283_v58 = vmul.f32 0.03125, %v241_v56  ;;  %v282_v61 = vmul.f32 0.03125, %v238_v57  ;;  %v324_v62 = vmul.f32 %v1075_v13, %v1075_v13  ;;  %v325_v18 = vmul.f32 %v1072_v14, %v1072_v14 }
 0x18f   :  { %v1085_v17 = vsub.f32 %v975_v24, %v283_v58  ;;  %v1088_v63 = vsub.f32 %v972_v23, %v282_v61  ;;  %v364_v3 = vsel %vm211_vm2, %v324_v62, 0.0  ;;  %v367_v9 = vsel %vm211_vm2, %v325_v18, 0.0  ;;  %v1120_v61 = vld [vmem:[%s1297_s4] ss:$0 sm:$0xff] }
 0x190   :  { %v272_v4 = vpop.xlane.xlu1 %271  ;;  %386 = vadd.xlane.f32.xlu1 %v385_v0  ;;  %365 = vadd.xlane.f32.xlu0 %v364_v3  ;;  %v268_v5 = vpop.xlane.xlu0 %267 }
 0x191   :  { %v293_v6 = vmul.f32 0.03125, %v272_v4  ;;  %v292_v7 = vmul.f32 0.03125, %v268_v5  ;;  %v322_v8 = vmul.f32 %v1088_v63, %v1088_v63  ;;  %v323_v60 = vmul.f32 %v1085_v17, %v1085_v17 }
 0x193   :  { %v1096_v24 = vsub.f32 %v981_v26, %v293_v6  ;;  %v1099_v23 = vsub.f32 %v978_v25, %v292_v7  ;;  %v358_v12 = vsel %vm211_vm2, %v322_v8, 0.0  ;;  %v361_v19 = vsel %vm211_vm2, %v323_v60, 0.0 }
 0x194   :  { %368 = vadd.xlane.f32.xlu1 %v367_v9  ;;  %359 = vadd.xlane.f32.xlu0 %v358_v12 }
 0x195   :  { %v332_v16 = vmul.f32 %v1099_v23, %v1099_v23  ;;  %v333_v26 = vmul.f32 %v1096_v24, %v1096_v24 }
 0x197   :  { %v388_v20 = vsel %vm211_vm2, %v332_v16, 0.0  ;;  %v391_v25 = vsel %vm269_vm3, %v333_v26, 0.0 }
 0x198   :  { %362 = vadd.xlane.f32.xlu1 %v361_v19  ;;  %389 = vadd.xlane.f32.xlu0 %v388_v20 }
 0x19c   :  { %392 = vadd.xlane.f32.xlu1 %v391_v25 }
 0x201   :  { %v342_v21 = vpop.xlane.xlu0 %341 }
 0x202   :  { %v396_v22 = vmul.f32 0.03125, %v342_v21 }
 0x204   :  { %v416_v27 = vadd.f32 1e-05, %v396_v22 }
 0x205   :  { %v345_v28 = vpop.xlane.xlu1 %344  ;;  %v378_v29 = vpop.xlane.xlu0 %377 }
 0x206   :  { %700 = vrsqrt.f32 %v416_v27  ;;  %v397_v30 = vmul.f32 0.03125, %v345_v28  ;;  %v408_v31 = vmul.f32 0.03125, %v378_v29 }
 0x208   :  { %v417_v32 = vadd.f32 1e-05, %v397_v30  ;;  %v428_v33 = vadd.f32 1e-05, %v408_v31 }
 0x209   :  { %v381_v34 = vpop.xlane.xlu1 %380  ;;  %v336_v39 = vpop.xlane.xlu0 %335 }
 0x20a   :  { %702 = vrsqrt.f32 %v417_v32  ;;  %v409_v40 = vmul.f32 0.03125, %v381_v34  ;;  %v394_v11 = vmul.f32 0.03125, %v336_v39 }
 0x20b   :  { %704 = vrsqrt.f32 %v428_v33 }
 0x20c   :  { %v429_v42 = vadd.f32 1e-05, %v409_v40  ;;  %v414_v45 = vadd.f32 1e-05, %v394_v11 }
 0x20d   :  { %v339_v48 = vpop.xlane.xlu1 %338  ;;  %v372_v38 = vpop.xlane.xlu0 %371 }
 0x20e   :  { %706 = vrsqrt.f32 %v429_v42  ;;  %v395_v37 = vmul.f32 0.03125, %v339_v48  ;;  %v406_v51 = vmul.f32 0.03125, %v372_v38 }
 0x20f   :  { %708 = vrsqrt.f32 %v414_v45 }
 0x210   :  { %v701_v52 = vpop.eup %700  ;;  %v415_v54 = vadd.f32 1e-05, %v395_v37  ;;  %v426_v44 = vadd.f32 1e-05, %v406_v51 }
 0x211   :  { %v456_v56 = vmul.f32 %v701_v52, %v995_v36  ;;  %v375_v57 = vpop.xlane.xlu1 %374  ;;  %v354_v58 = vpop.xlane.xlu0 %353 }
 0x212   :  { %710 = vrsqrt.f32 %v415_v54  ;;  %v407_v62 = vmul.f32 0.03125, %v375_v57  ;;  %v400_v18 = vmul.f32 0.03125, %v354_v58 }
 0x213   :  { %v482_v0 = vmul.f32 %v1114_v53, %v456_v56  ;;  %712 = vrsqrt.f32 %v426_v44 }
 0x214   :  { %v703_v3 = vpop.eup %702  ;;  %v427_v4 = vadd.f32 1e-05, %v407_v62  ;;  %v420_v5 = vadd.f32 1e-05, %v400_v18 }
 0x215   :  { %v705_v6 = vpop.eup %704  ;;  %v508_v7 = vadd.f32 %v1120_v61, %v482_v0  ;;  %v457_v36 = vmul.f32 %v703_v3, %v1000_v46  ;;  %v357_v8 = vpop.xlane.xlu1 %356 }
 0x216   :  { %v348_v9 = vpop.xlane.xlu0 %347  ;;  %v468_v12 = vmul.f32 %v705_v6, %v992_v35  ;;  %714 = vrsqrt.f32 %v427_v4  ;;  %v401_v60 = vmul.f32 0.03125, %v357_v8 }
 0x217   :  { %v398_v16 = vmul.f32 0.03125, %v348_v9  ;;  %v548_v19 = vmul.f32 0.70710677, %v508_v7  ;;  %v483_v20 = vmul.f32 %v1114_v53, %v457_v36  ;;  %716 = vrsqrt.f32 %v420_v5 }
 0x218   :  { %v707_v26 = vpop.eup %706  ;;  %v494_v25 = vmul.f32 %v1114_v53, %v468_v12  ;;  %v421_v21 = vadd.f32 1e-05, %v401_v60  ;;  %v528_v0 = vmul.f32 0.5, %v508_v7 }
 0x219   :  { %v418_v22 = vadd.f32 1e-05, %v398_v16  ;;  %v709_v27 = vpop.eup %708  ;;  %718 = verf.f32 %v548_v19  ;;  %v509_v46 = vadd.f32 %v1120_v61, %v483_v20  ;;  %v469_v28 = vmul.f32 %v707_v26, %v1013_v55  ;;  %v351_v29 = vpop.xlane.xlu1 %350 }
 0x21a   :  { %v520_v35 = vadd.f32 %v1120_v61, %v494_v25  ;;  %v454_v30 = vmul.f32 %v709_v27, %v1003_v47  ;;  %720 = vrsqrt.f32 %v421_v21  ;;  %v399_v31 = vmul.f32 0.03125, %v351_v29  ;;  %v384_v32 = vpop.xlane.xlu0 %383 }
 0x21b   :  { %v549_v33 = vmul.f32 0.70710677, %v509_v46  ;;  %v495_v34 = vmul.f32 %v1114_v53, %v469_v28  ;;  %722 = vrsqrt.f32 %v418_v22  ;;  %v410_v38 = vmul.f32 0.03125, %v384_v32 }
 0x21c   :  { %v711_v39 = vpop.eup %710  ;;  %v560_v40 = vmul.f32 0.70710677, %v520_v35  ;;  %v480_v11 = vmul.f32 %v1114_v53, %v454_v30  ;;  %v419_v42 = vadd.f32 1e-05, %v399_v31  ;;  %v529_v16 = vmul.f32 0.5, %v509_v46 }
 0x21d   :  { %v713_v45 = vpop.eup %712  ;;  %724 = verf.f32 %v549_v33  ;;  %v521_v55 = vadd.f32 %v1120_v61, %v495_v34  ;;  %v455_v48 = vmul.f32 %v711_v39, %v1027_v49  ;;  %v387_v47 = vpop.xlane.xlu1 %386  ;;  %v430_v62 = vadd.f32 1e-05, %v410_v38 }
 0x21e   :  { %726 = verf.f32 %v560_v40  ;;  %v1137_v37 = vadd.f32 %v1120_v61, %v480_v11  ;;  %v466_v51 = vmul.f32 %v713_v45, %v1016_v43  ;;  %v411_v52 = vmul.f32 0.03125, %v387_v47  ;;  %v366_v49 = vpop.xlane.xlu0 %365 }
 0x21f   :  { %v561_v54 = vmul.f32 0.70710677, %v521_v55  ;;  %v481_v44 = vmul.f32 %v1114_v53, %v455_v48  ;;  %728 = vrsqrt.f32 %v419_v42  ;;  %v404_v12 = vmul.f32 0.03125, %v366_v49 }
 0x220   :  { %v715_v56 = vpop.eup %714  ;;  %v546_v57 = vmul.f32 0.70710677, %v1137_v37  ;;  %v492_v58 = vmul.f32 %v1114_v53, %v466_v51  ;;  %v431_v6 = vadd.f32 1e-05, %v411_v52  ;;  %v540_v25 = vmul.f32 0.5, %v520_v35 }
 0x221   :  { %v717_v18 = vpop.eup %716  ;;  %730 = verf.f32 %v561_v54  ;;  %v507_v3 = vadd.f32 %v1120_v61, %v481_v44  ;;  %v467_v4 = vmul.f32 %v715_v56, %v1024_v50  ;;  %v369_v20 = vpop.xlane.xlu1 %368  ;;  %v424_v35 = vadd.f32 1e-05, %v404_v12 }
 0x222   :  { %732 = verf.f32 %v546_v57  ;;  %v1146_v43 = vadd.f32 %v1120_v61, %v492_v58  ;;  %v460_v5 = vmul.f32 %v717_v18, %v1040_v15  ;;  %v541_v32 = vmul.f32 0.5, %v521_v55 }
 0x223   :  { %v719_v36 = vpop.eup %718  ;;  %v547_v8 = vmul.f32 0.70710677, %v507_v3  ;;  %v493_v9 = vmul.f32 %v1114_v53, %v467_v4  ;;  %734 = vrsqrt.f32 %v430_v62  ;;  %v405_v42 = vmul.f32 0.03125, %v369_v20 }
 0x224   :  { %v721_v60 = vpop.eup %720  ;;  %v588_v7 = vadd.f32 1.0, %v719_v36  ;;  %v558_v19 = vmul.f32 0.70710677, %v1146_v43  ;;  %v486_v50 = vmul.f32 %v1114_v53, %v460_v5  ;;  %v526_v52 = vmul.f32 0.5, %v1137_v37 }
 0x225   :  { %v723_v26 = vpop.eup %722  ;;  %736 = verf.f32 %v547_v8  ;;  %v1153_v15 = vadd.f32 %v1120_v61, %v493_v9  ;;  %v461_v21 = vmul.f32 %v721_v60, %v1037_v59  ;;  %v363_v55 = vpop.xlane.xlu1 %362  ;;  %v527_v57 = vmul.f32 0.5, %v507_v3 }
 0x226   :  { %v608_v22 = vmul.f32 %v588_v7, %v528_v0  ;;  %738 = verf.f32 %v558_v19  ;;  %v1157_v27 = vadd.f32 %v1120_v61, %v486_v50  ;;  %v458_v46 = vmul.f32 %v723_v26, %v1051_v1  ;;  %v360_v1 = vpop.xlane.xlu0 %359 }
 0x227   :  { %v725_v28 = vpop.eup %724  ;;  %v559_v29 = vmul.f32 0.70710677, %v1153_v15  ;;  %v487_v30 = vmul.f32 %v1114_v53, %v461_v21  ;;  %740 = vrsqrt.f32 %v431_v6  ;;  %v425_v49 = vadd.f32 1e-05, %v405_v42 }
 0x228   :  { %v727_v31 = vpop.eup %726  ;;  %628 = vst.msk [vmem:[%s1298_s5 + $0x10] sm:$0xff] %vm211_vm2, %v608_v22  ;;  %v589_v59 = vadd.f32 1.0, %v725_v28  ;;  %v552_v33 = vmul.f32 0.70710677, %v1157_v27  ;;  %v484_v34 = vmul.f32 %v1114_v53, %v458_v46  ;;  %v402_v18 = vmul.f32 0.03125, %v360_v1 }
 0x229   :  { %v729_v39 = vpop.eup %728  ;;  %v600_v40 = vadd.f32 1.0, %v727_v31  ;;  %742 = verf.f32 %v559_v29  ;;  %v1169_v11 = vadd.f32 %v1120_v61, %v487_v30  ;;  %v403_v9 = vmul.f32 0.03125, %v363_v55 }
 0x22a   :  { %v609_v45 = vmul.f32 %v589_v59, %v529_v16  ;;  %744 = verf.f32 %v552_v33  ;;  %v1172_v48 = vadd.f32 %v1120_v61, %v484_v34  ;;  %v459_v38 = vmul.f32 %v729_v39, %v1048_v2  ;;  %v390_v5 = vpop.xlane.xlu0 %389 }
 0x22b   :  { %v731_v47 = vpop.eup %730  ;;  %v620_v51 = vmul.f32 %v600_v40, %v540_v25  ;;  %v553_v54 = vmul.f32 0.70710677, %v1169_v11  ;;  %746 = vrsqrt.f32 %v424_v35  ;;  %v422_v8 = vadd.f32 1e-05, %v402_v18 }
 0x22c   :  { %v733_v44 = vpop.eup %732  ;;  %629 = vst.msk [vmem:[%s1298_s5 + $0x18] sm:$0xff] %vm211_vm2, %v609_v45  ;;  %v601_v56 = vadd.f32 1.0, %v731_v47  ;;  %v550_v58 = vmul.f32 0.70710677, %v1172_v48  ;;  %v485_v2 = vmul.f32 %v1114_v53, %v459_v38  ;;  %v538_v7 = vmul.f32 0.5, %v1146_v43 }
 0x22d   :  { %v735_v62 = vpop.eup %734  ;;  %640 = vst.msk [vmem:[%s1298_s5 + $0x70] sm:$0xff] %vm211_vm2, %v620_v51  ;;  %v586_v37 = vadd.f32 1.0, %v733_v44  ;;  %748 = verf.f32 %v553_v54  ;;  %v423_v26 = vadd.f32 1e-05, %v403_v9  ;;  %v412_v25 = vmul.f32 0.03125, %v390_v5 }
 0x22e   :  { %v621_v0 = vmul.f32 %v601_v56, %v541_v32  ;;  %750 = verf.f32 %v550_v58  ;;  %v1188_v4 = vadd.f32 %v1120_v61, %v485_v2  ;;  %v470_v3 = vmul.f32 %v735_v62, %v1064_v41  ;;  %v393_v41 = vpop.xlane.xlu1 %392 }
 0x22f   :  { %v737_v6 = vpop.eup %736  ;;  %v606_v36 = vmul.f32 %v586_v37, %v526_v52  ;;  %752 = vrsqrt.f32 %v425_v49  ;;  %v432_v29 = vadd.f32 1e-05, %v412_v25  ;;  %v413_v30 = vmul.f32 0.03125, %v393_v41 }
 0x230   :  { %v739_v12 = vpop.eup %738  ;;  %641 = vst.msk [vmem:[%s1298_s5 + $0x78] sm:$0xff] %vm211_vm2, %v621_v0  ;;  %v587_v60 = vadd.f32 1.0, %v737_v6  ;;  %v551_v16 = vmul.f32 0.70710677, %v1188_v4  ;;  %v496_v19 = vmul.f32 %v1114_v53, %v470_v3  ;;  %754 = vrsqrt.f32 %v422_v8 }
 0x231   :  { %v741_v50 = vpop.eup %740  ;;  %626 = vst.msk [vmem:[%s1298_s5] sm:$0xff] %vm211_vm2, %v606_v36  ;;  %v598_v20 = vadd.f32 1.0, %v739_v12  ;;  %v539_v31 = vmul.f32 0.5, %v1153_v15  ;;  %v433_v39 = vadd.f32 1e-05, %v413_v30 }
 0x232   :  { %v607_v21 = vmul.f32 %v587_v60, %v527_v57  ;;  %756 = verf.f32 %v551_v16  ;;  %v1203_v22 = vadd.f32 %v1120_v61, %v496_v19  ;;  %v471_v43 = vmul.f32 %v741_v50, %v1061_v10 }
 0x233   :  { %v743_v46 = vpop.eup %742  ;;  %v618_v28 = vmul.f32 %v598_v20, %v538_v7  ;;  %758 = vrsqrt.f32 %v423_v26  ;;  %v532_v10 = vmul.f32 0.5, %v1157_v27  ;;  %v533_v27 = vmul.f32 0.5, %v1169_v11 }
 0x234   :  { %v745_v35 = vpop.eup %744  ;;  %627 = vst.msk [vmem:[%s1298_s5 + $0x8] sm:$0xff] %vm211_vm2, %v607_v21  ;;  %v599_v59 = vadd.f32 1.0, %v743_v46  ;;  %v562_v32 = vmul.f32 0.70710677, %v1203_v22  ;;  %v497_v33 = vmul.f32 %v1114_v53, %v471_v43  ;;  %760 = vrsqrt.f32 %v432_v29 }
 0x235   :  { %v747_v34 = vpop.eup %746  ;;  %638 = vst.msk [vmem:[%s1298_s5 + $0x60] sm:$0xff] %vm211_vm2, %v618_v28  ;;  %v592_v1 = vadd.f32 1.0, %v745_v35 }
 0x236   :  { %v619_v40 = vmul.f32 %v599_v59, %v539_v31  ;;  %762 = verf.f32 %v562_v32  ;;  %v523_v15 = vadd.f32 %v1120_v61, %v497_v33  ;;  %v464_v42 = vmul.f32 %v747_v34, %v1075_v13 }
 0x237   :  { %v749_v45 = vpop.eup %748  ;;  %v612_v38 = vmul.f32 %v592_v1, %v532_v10  ;;  %764 = vrsqrt.f32 %v433_v39  ;;  %v530_v13 = vmul.f32 0.5, %v1172_v48 }
 0x238   :  { %v751_v55 = vpop.eup %750  ;;  %639 = vst.msk [vmem:[%s1298_s5 + $0x68] sm:$0xff] %vm211_vm2, %v619_v40  ;;  %v593_v47 = vadd.f32 1.0, %v749_v45  ;;  %v563_v51 = vmul.f32 0.70710677, %v523_v15  ;;  %v490_v52 = vmul.f32 %v1114_v53, %v464_v42 }
 0x239   :  { %v753_v54 = vpop.eup %752  ;;  %632 = vst.msk [vmem:[%s1298_s5 + $0x30] sm:$0xff] %vm211_vm2, %v612_v38  ;;  %v590_v44 = vadd.f32 1.0, %v751_v55 }
 0x23a   :  { %v613_v56 = vmul.f32 %v593_v47, %v533_v27  ;;  %766 = verf.f32 %v563_v51  ;;  %v516_v57 = vadd.f32 %v1120_v61, %v490_v52  ;;  %v465_v58 = vmul.f32 %v753_v54, %v1072_v14  ;;  %v755_v11 = vpop.eup %754 }
 0x23b   :  { %v610_v2 = vmul.f32 %v590_v44, %v530_v13  ;;  %v462_v48 = vmul.f32 %v755_v11, %v1088_v63  ;;  %v531_v14 = vmul.f32 0.5, %v1188_v4  ;;  %v542_v4 = vmul.f32 0.5, %v1203_v22 }
 0x23c   :  { %v757_v62 = vpop.eup %756  ;;  %633 = vst.msk [vmem:[%s1298_s5 + $0x38] sm:$0xff] %vm211_vm2, %v613_v56  ;;  %v556_v37 = vmul.f32 0.70710677, %v516_v57  ;;  %v491_v49 = vmul.f32 %v1114_v53, %v465_v58  ;;  %v543_v22 = vmul.f32 0.5, %v523_v15  ;;  %v536_v35 = vmul.f32 0.5, %v516_v57 }
 0x23d   :  { %v759_v18 = vpop.eup %758  ;;  %630 = vst.msk [vmem:[%s1298_s5 + $0x20] sm:$0xff] %vm211_vm2, %v610_v2  ;;  %v591_v0 = vadd.f32 1.0, %v757_v62  ;;  %v488_v5 = vmul.f32 %v1114_v53, %v462_v48 }
 0x23e   :  { %768 = verf.f32 %v556_v37  ;;  %v517_v3 = vadd.f32 %v1120_v61, %v491_v49  ;;  %v463_v6 = vmul.f32 %v759_v18, %v1085_v17  ;;  %v761_v36 = vpop.eup %760 }
 0x23f   :  { %v611_v8 = vmul.f32 %v591_v0, %v531_v14  ;;  %v514_v12 = vadd.f32 %v1120_v61, %v488_v5  ;;  %v472_v19 = vmul.f32 %v761_v36, %v1099_v23 }
 0x240   :  { %v763_v9 = vpop.eup %762  ;;  %v557_v63 = vmul.f32 0.70710677, %v517_v3  ;;  %v489_v60 = vmul.f32 %v1114_v53, %v463_v6 }
 0x241   :  { %v765_v7 = vpop.eup %764  ;;  %631 = vst.msk [vmem:[%s1298_s5 + $0x28] sm:$0xff] %vm211_vm2, %v611_v8  ;;  %v602_v16 = vadd.f32 1.0, %v763_v9  ;;  %v554_v17 = vmul.f32 0.70710677, %v514_v12  ;;  %v498_v20 = vmul.f32 %v1114_v53, %v472_v19  ;;  %v534_v1 = vmul.f32 0.5, %v514_v12 }
 0x242   :  { %770 = verf.f32 %v557_v63  ;;  %v515_v41 = vadd.f32 %v1120_v61, %v489_v60  ;;  %v473_v26 = vmul.f32 %v765_v7, %v1096_v24 }
 0x243   :  { %v622_v50 = vmul.f32 %v602_v16, %v542_v4  ;;  %772 = verf.f32 %v554_v17  ;;  %v524_v23 = vadd.f32 %v1120_v61, %v498_v20 }
 0x244   :  { %v767_v25 = vpop.eup %766  ;;  %v555_v21 = vmul.f32 0.70710677, %v515_v41  ;;  %v499_v46 = vmul.f32 %v1114_v53, %v473_v26  ;;  %v537_v53 = vmul.f32 0.5, %v517_v3  ;;  %v535_v42 = vmul.f32 0.5, %v515_v41 }
 0x245   :  { %642 = vst.msk [vmem:[%s1298_s5 + $0x80] sm:$0xff] %vm211_vm2, %v622_v50  ;;  %v603_v43 = vadd.f32 1.0, %v767_v25  ;;  %v564_v29 = vmul.f32 0.70710677, %v524_v23  ;;  %v544_v27 = vmul.f32 0.5, %v524_v23 }
 0x246   :  { %774 = verf.f32 %v555_v21  ;;  %v525_v30 = vadd.f32 %v1120_v61, %v499_v46 }
 0x247   :  { %v623_v28 = vmul.f32 %v603_v43, %v543_v22  ;;  %776 = verf.f32 %v564_v29 }
 0x248   :  { %v769_v24 = vpop.eup %768  ;;  %v565_v59 = vmul.f32 0.70710677, %v525_v30  ;;  %v545_v54 = vmul.f32 0.5, %v525_v30 }
 0x249   :  { %643 = vst.msk [vmem:[%s1298_s5 + $0x88] sm:$0xff] %vm211_vm2, %v623_v28  ;;  %v596_v31 = vadd.f32 1.0, %v769_v24 }
 0x24a   :  { %778 = verf.f32 %v565_v59 }
 0x24b   :  { %v616_v32 = vmul.f32 %v596_v31, %v536_v35 }
 0x24c   :  { %v771_v33 = vpop.eup %770 }
 0x24d   :  { %636 = vst.msk [vmem:[%s1298_s5 + $0x50] sm:$0xff] %vm211_vm2, %v616_v32  ;;  %v597_v61 = vadd.f32 1.0, %v771_v33  ;;  %v773_v34 = vpop.eup %772 }
 0x24e   :  { %v594_v39 = vadd.f32 1.0, %v773_v34 }
 0x24f   :  { %v617_v10 = vmul.f32 %v597_v61, %v537_v53 }
 0x250   :  { %v775_v40 = vpop.eup %774  ;;  %v614_v15 = vmul.f32 %v594_v39, %v534_v1 }
 0x251   :  { %637 = vst.msk [vmem:[%s1298_s5 + $0x58] sm:$0xff] %vm211_vm2, %v617_v10  ;;  %v595_v45 = vadd.f32 1.0, %v775_v40  ;;  %v777_v38 = vpop.eup %776 }
 0x252   :  { %634 = vst.msk [vmem:[%s1298_s5 + $0x40] sm:$0xff] %vm211_vm2, %v614_v15  ;;  %v604_v47 = vadd.f32 1.0, %v777_v38 }
 0x253   :  { %v615_v55 = vmul.f32 %v595_v45, %v535_v42 }
 0x254   :  { %v779_v51 = vpop.eup %778  ;;  %v624_v52 = vmul.f32 %v604_v47, %v544_v27 }
 0x255   :  { %635 = vst.msk [vmem:[%s1298_s5 + $0x48] sm:$0xff] %vm211_vm2, %v615_v55  ;;  %v605_v13 = vadd.f32 1.0, %v779_v51 }
 0x256   :  { %644 = vst.msk [vmem:[%s1298_s5 + $0x90] sm:$0xff] %vm211_vm2, %v624_v52 }
 0x257   :  { %v625_v44 = vmul.f32 %v605_v13, %v545_v54 }
 0x259   :  { %645 = vst.msk [vmem:[%s1298_s5 + $0x98] sm:$0x3f] %vm269_vm3, %v625_v44 }

</bundles_post_ra>
